<compile_context>
chip_gen: v7x
topology: tpu7x:2x2x1
jax: 0.10.0
libtpu: 0.0.40
codegen_flags: <defaults>
</compile_context>

<pallas_src>
import functools
import math

import jax
import jax.numpy as jnp
from jax.experimental import pallas as pl
from jax.experimental.pallas import tpu as pltpu


_VMEM_LIMIT = 32 * 1024 * 1024  # comfortably under v7x's 64 MiB physical VMEM
# Finite large negative instead of -inf so a (hypothetical) fully-masked row
# can never produce exp(-inf - (-inf)) = NaN.
_MASK_VALUE = -0.7 * float(jnp.finfo(jnp.float32).max)


def _pick_tile(dim, candidates):
    """Largest candidate that evenly divides `dim`, else the full dim."""
    for c in candidates:
        if c <= dim and dim % c == 0:
            return c
    return dim


# ----------------------------------------------------------------------------
# Kernel 1: tiled linear  y = x @ W + b   (used for c_attn and c_proj)
# ----------------------------------------------------------------------------
def _linear_kernel(x_ref, w_ref, b_ref, o_ref, acc_ref):
    k = pl.program_id(2)

    @pl.when(k == 0)
    def _():
        acc_ref[...] = jnp.zeros_like(acc_ref)

    acc_ref[...] += jnp.dot(x_ref[...], w_ref[...],
                            preferred_element_type=jnp.float32)

    @pl.when(k == pl.num_programs(2) - 1)
    def _():
        o_ref[...] = (acc_ref[...] +
                      b_ref[...].astype(jnp.float32)).astype(o_ref.dtype)


def pallas_linear(x2d, w, b):
    """y = x2d @ w + b, tiled over (M, N, K) with a pipelined f32 accumulator."""
    M, K = x2d.shape
    N = w.shape[1]
    tm = _pick_tile(M, (512, 256, 128))
    tn = _pick_tile(N, (512, 256, 128))
    tk = _pick_tile(K, (512, 256, 128))
    grid = (M // tm, N // tn, K // tk)
    return pl.pallas_call(
        _linear_kernel,
        out_shape=jax.ShapeDtypeStruct((M, N), x2d.dtype),
        grid=grid,
        in_specs=[
            pl.BlockSpec((tm, tk), lambda i, j, k: (i, k)),
            pl.BlockSpec((tk, tn), lambda i, j, k: (k, j)),
            pl.BlockSpec((1, tn), lambda i, j, k: (0, j)),
        ],
        out_specs=pl.BlockSpec((tm, tn), lambda i, j, k: (i, j)),
        scratch_shapes=[pltpu.VMEM((tm, tn), jnp.float32)],
        compiler_params=pltpu.CompilerParams(
            dimension_semantics=("parallel", "parallel", "arbitrary"),
            vmem_limit_bytes=_VMEM_LIMIT),
    )(x2d, w, b.reshape(1, N))


# ----------------------------------------------------------------------------
# Kernel 2: flash-style causal multi-head attention, heads packed in lane dim.
# ----------------------------------------------------------------------------
def _flash_attention_kernel(q_ref, k_ref, v_ref, o_ref,
                            m_sc, l_sc, acc_sc, *, n_head):
    qi = pl.program_id(1)
    ki = pl.program_id(2)
    _, block_q, C = q_ref.shape
    _, block_k, _ = k_ref.shape
    hd = C // n_head

    @pl.when(ki == 0)
    def _():
        m_sc[...] = jnp.full_like(m_sc, -jnp.inf)
        l_sc[...] = jnp.zeros_like(l_sc)
        acc_sc[...] = jnp.zeros_like(acc_sc)

    # Causal skip: with block_q == block_k, kv tile ki only contributes when
    # ki <= qi, so fully-masked tiles never touch the MXU.  (This also
    # guarantees every computed row has >= 1 unmasked column -> no NaNs.)
    @pl.when(ki <= qi)
    def _():
        scale = jnp.asarray(1.0 / math.sqrt(hd), q_ref.dtype)
        # Keep MXU operands in the input dtype (bf16-native when bf16) and
        # fold the softmax scale into q instead of the (T x T) scores.
        qh = (q_ref[0] * scale).reshape(block_q, n_head, hd).transpose(1, 0, 2)
        kh = k_ref[0].reshape(block_k, n_head, hd).transpose(1, 0, 2)
        vh = v_ref[0].reshape(block_k, n_head, hd).transpose(1, 0, 2)

        # (H, bq, bk) scores: contract the last dims of q/k directly
        # (no explicit k transpose), accumulate in f32 on the MXU.
        s = jnp.einsum("hqd,hkd->hqk", qh, kh,
                       preferred_element_type=jnp.float32)

        row = qi * block_q + jax.lax.broadcasted_iota(
            jnp.int32, (n_head, block_q, block_k), 1)
        col = ki * block_k + jax.lax.broadcasted_iota(
            jnp.int32, (n_head, block_q, block_k), 2)
        s = jnp.where(col <= row, s, _MASK_VALUE)

        # online softmax update (all element-wise math in f32)
        m_prev = m_sc[...]                                   # (H, bq, 1)
        m_new = jnp.maximum(m_prev, jnp.max(s, axis=-1, keepdims=True))
        alpha = jnp.exp(m_prev - m_new)
        p = jnp.exp(s - m_new)                               # (H, bq, bk) f32
        l_sc[...] = alpha * l_sc[...] + jnp.sum(p, axis=-1, keepdims=True)
        acc_sc[...] = alpha * acc_sc[...] + jnp.einsum(
            "hqk,hkd->hqd", p.astype(v_ref.dtype), vh,
            preferred_element_type=jnp.float32)
        m_sc[...] = m_new

    @pl.when(ki == pl.num_programs(2) - 1)
    def _():
        inv_l = pl.reciprocal(l_sc[...], approx=True)        # EUP slot
        out = acc_sc[...] * inv_l                            # (H, bq, hd) f32
        # Write one lane-dense (block_q, C) slab: output last dim is the full
        # embedding width, so stores are unmasked full-lane vst's.
        out = out.transpose(1, 0, 2).reshape(block_q, C)
        o_ref[0] = out.astype(o_ref.dtype)


def pallas_flash_attention(q, k, v, n_head):
    """Causal MHA over (B, T, C) activations (heads packed in the last dim)."""
    B, T, C = q.shape
    hd = C // n_head
    blk = _pick_tile(T, (512, 256, 128))
    block_q = block_k = blk
    grid = (B, T // block_q, T // block_k)

    kernel = functools.partial(_flash_attention_kernel, n_head=n_head)
    return pl.pallas_call(
        kernel,
        out_shape=jax.ShapeDtypeStruct((B, T, C), q.dtype),
        grid=grid,
        in_specs=[
            pl.BlockSpec((1, block_q, C), lambda b, qi, ki: (b, qi, 0)),
            pl.BlockSpec((1, block_k, C), lambda b, qi, ki: (b, ki, 0)),
            pl.BlockSpec((1, block_k, C), lambda b, qi, ki: (b, ki, 0)),
        ],
        out_specs=pl.BlockSpec((1, block_q, C), lambda b, qi, ki: (b, qi, 0)),
        scratch_shapes=[
            pltpu.VMEM((n_head, block_q, 1), jnp.float32),   # running max m
            pltpu.VMEM((n_head, block_q, 1), jnp.float32),   # running sum l
            pltpu.VMEM((n_head, block_q, hd), jnp.float32),  # output accum
        ],
        compiler_params=pltpu.CompilerParams(
            dimension_semantics=("parallel", "parallel", "arbitrary"),
            vmem_limit_bytes=_VMEM_LIMIT),
    )(q, k, v)


# ----------------------------------------------------------------------------
# Full module forward: CausalSelfAttention
# ----------------------------------------------------------------------------
def causal_self_attention(x, params, n_head):
    B, T, C = x.shape

    # qkv = c_attn(x)  (tiled, pipelined matmul)
    qkv = pallas_linear(x.reshape(B * T, C),
                        params["c_attn_w"], params["c_attn_b"])  # (B*T, 3C)
    qkv = qkv.reshape(B, T, 3 * C)

    # Contiguous column slices only (cheap, no head transposes/round-trips);
    # heads stay packed in the lane dim and are split inside the kernel.
    # Folding these slices into the attention BlockSpec index_map would need
    # C % 128 == 0 so the q/k/v column ranges land on lane-block boundaries.
    q = jax.lax.slice_in_dim(qkv, 0, C, axis=2)
    k = jax.lax.slice_in_dim(qkv, C, 2 * C, axis=2)
    v = jax.lax.slice_in_dim(qkv, 2 * C, 3 * C, axis=2)

    y = pallas_flash_attention(q, k, v, n_head)               # (B, T, C)

    # y = c_proj(y)
    y = pallas_linear(y.reshape(B * T, C),
                      params["c_proj_w"], params["c_proj_b"])
    return y.reshape(B, T, C)


# ----------------------------------------------------------------------------
# Pure-JAX reference for verification
# ----------------------------------------------------------------------------
def reference(x, params, n_head):
    B, T, C = x.shape
    hd = C // n_head
    qkv = x @ params["c_attn_w"] + params["c_attn_b"]
    q, k, v = jnp.split(qkv, 3, axis=2)
    q = q.reshape(B, T, n_head, hd).transpose(0, 2, 1, 3)
    k = k.reshape(B, T, n_head, hd).transpose(0, 2, 1, 3)
    v = v.reshape(B, T, n_head, hd).transpose(0, 2, 1, 3)
    s = jnp.einsum("bhqd,bhkd->bhqk", q, k) / math.sqrt(hd)
    mask = jnp.tril(jnp.ones((T, T), dtype=bool))
    s = jnp.where(mask[None, None], s, -jnp.inf)
    att = jax.nn.softmax(s, axis=-1)
    y = jnp.einsum("bhqk,bhkd->bhqd", att, v)
    y = y.transpose(0, 2, 1, 3).reshape(B, T, C)
    return y @ params["c_proj_w"] + params["c_proj_b"]


if __name__ == "__main__":
    # Small config: n_embd=32, n_head=4, block_size (= T) = 8, batch = 2
    B, T, C, n_head = 2, 8, 32, 4

    key = jax.random.PRNGKey(0)
    kx, k1, k2, k3, k4 = jax.random.split(key, 5)

    # Deterministic synthetic parameters (nn.Linear shapes stored as (in, out)).
    params = {
        "c_attn_w": jax.random.normal(k1, (C, 3 * C), jnp.float32) * 0.02,
        "c_attn_b": jax.random.normal(k2, (3 * C,), jnp.float32) * 0.02,
        "c_proj_w": jax.random.normal(k3, (C, C), jnp.float32) * 0.02,
        "c_proj_b": jax.random.normal(k4, (C,), jnp.float32) * 0.02,
    }

    x = jax.random.normal(kx, (B, T, C), jnp.float32)

    fwd = jax.jit(functools.partial(causal_self_attention, n_head=n_head))
    y = jax.block_until_ready(fwd(x, params))

    y_ref = reference(x, params, n_head)
    assert y.shape == (B, T, C)
    err = float(jnp.max(jnp.abs(y - y_ref)))
    # slightly looser tolerance: approx reciprocal + scale folding + online
    # softmax reorder relative to the plain reference.
    assert jnp.allclose(y, y_ref, atol=1e-3, rtol=1e-2), f"max err {err}"

    print("KERNEL_OK")
</pallas_src>

<mosaic_0001>
module attributes {stable_mosaic.version = 11 : i64} {
  func.func @_flash_attention_kernel(%arg0: i32, %arg1: i32, %arg2: i32, %arg3: memref<1x8x32xf32, #tpu.memory_space<vmem>>, %arg4: memref<1x8x32xf32, #tpu.memory_space<vmem>>, %arg5: memref<1x8x32xf32, #tpu.memory_space<vmem>>, %arg6: memref<1x8x32xf32, #tpu.memory_space<vmem>>, %arg7: memref<4x8x1xf32, #tpu.memory_space<vmem>>, %arg8: memref<4x8x1xf32, #tpu.memory_space<vmem>>, %arg9: memref<4x8x8xf32, #tpu.memory_space<vmem>>) attributes {dimension_semantics = [#tpu.dimension_semantics<parallel>, #tpu.dimension_semantics<parallel>, #tpu.dimension_semantics<arbitrary>], iteration_bounds = array<i64: 2, 1, 1>, scalar_prefetch = 0 : i64, scratch_operands = 3 : i64, tpu.core_type = #tpu.core_type<tc>, window_params = [{transform_indices = @transform_0, window_bounds = array<i64: 1, 8, 32>}, {transform_indices = @transform_1, window_bounds = array<i64: 1, 8, 32>}, {transform_indices = @transform_2, window_bounds = array<i64: 1, 8, 32>}, {transform_indices = @transform_3, window_bounds = array<i64: 1, 8, 32>}]} {
    %c0_i32 = arith.constant 0 : i32
    %0 = arith.cmpi eq, %arg2, %c0_i32 : i32
    %1 = arith.extui %0 : i1 to i32
    %c0_i32_0 = arith.constant 0 : i32
    %2 = arith.cmpi ne, %1, %c0_i32_0 : i32
    scf.if %2 {
      %cst = arith.constant 0xFF800000 : f32
      %9 = vector.broadcast %cst : f32 to vector<4x8x1xf32>
      %c0 = arith.constant 0 : index
      %c0_4 = arith.constant 0 : index
      %c0_5 = arith.constant 0 : index
      %10 = vector.load %arg7[%c0, %c0_4, %c0_5] : memref<4x8x1xf32, #tpu.memory_space<vmem>>, vector<4x8x1xf32>
      tpu.vector_store %arg7[%c0, %c0_4, %c0_5], %9 {strides = array<i32>} : memref<4x8x1xf32, #tpu.memory_space<vmem>>, vector<4x8x1xf32>,
      %cst_6 = arith.constant 0.000000e+00 : f32
      %11 = vector.broadcast %cst_6 : f32 to vector<4x8x1xf32>
      %c0_7 = arith.constant 0 : index
      %c0_8 = arith.constant 0 : index
      %c0_9 = arith.constant 0 : index
      %12 = vector.load %arg8[%c0_7, %c0_8, %c0_9] : memref<4x8x1xf32, #tpu.memory_space<vmem>>, vector<4x8x1xf32>
      tpu.vector_store %arg8[%c0_7, %c0_8, %c0_9], %11 {strides = array<i32>} : memref<4x8x1xf32, #tpu.memory_space<vmem>>, vector<4x8x1xf32>,
      %cst_10 = arith.constant 0.000000e+00 : f32
      %13 = vector.broadcast %cst_10 : f32 to vector<4x8x8xf32>
      %c0_11 = arith.constant 0 : index
      %c0_12 = arith.constant 0 : index
      %c0_13 = arith.constant 0 : index
      %14 = vector.load %arg9[%c0_11, %c0_12, %c0_13] : memref<4x8x8xf32, #tpu.memory_space<vmem>>, vector<4x8x8xf32>
      tpu.vector_store %arg9[%c0_11, %c0_12, %c0_13], %13 {strides = array<i32>} : memref<4x8x8xf32, #tpu.memory_space<vmem>>, vector<4x8x8xf32>,
    } else {
    }
    %3 = arith.cmpi sle, %arg2, %arg1 : i32
    %4 = arith.extui %3 : i1 to i32
    %c0_i32_1 = arith.constant 0 : i32
    %5 = arith.cmpi ne, %4, %c0_i32_1 : i32
    scf.if %5 {
      %c0 = arith.constant 0 : index
      %c0_4 = arith.constant 0 : index
      %c0_5 = arith.constant 0 : index
      %9 = vector.load %arg3[%c0, %c0_4, %c0_5] : memref<1x8x32xf32, #tpu.memory_space<vmem>>, vector<1x8x32xf32>
      %10 = vector.shape_cast %9 : vector<1x8x32xf32> to vector<8x32xf32>
      %cst = arith.constant 0.353553385 : f32
      %11 = vector.broadcast %cst : f32 to vector<8x32xf32>
      %12 = arith.mulf %10, %11 : vector<8x32xf32>
      %13 = vector.shape_cast %12 : vector<8x32xf32> to vector<8x4x8xf32>
      %14 = tpu.transpose %13, [1, 0, 2] : vector<8x4x8xf32> -> vector<4x8x8xf32>
      %c0_6 = arith.constant 0 : index
      %c0_7 = arith.constant 0 : index
      %c0_8 = arith.constant 0 : index
      %15 = vector.load %arg4[%c0_6, %c0_7, %c0_8] : memref<1x8x32xf32, #tpu.memory_space<vmem>>, vector<1x8x32xf32>
      %16 = vector.shape_cast %15 : vector<1x8x32xf32> to vector<8x32xf32>
      %17 = vector.shape_cast %16 : vector<8x32xf32> to vector<8x4x8xf32>
      %18 = tpu.transpose %17, [1, 0, 2] : vector<8x4x8xf32> -> vector<4x8x8xf32>
      %c0_9 = arith.constant 0 : index
      %c0_10 = arith.constant 0 : index
      %c0_11 = arith.constant 0 : index
      %19 = vector.load %arg5[%c0_9, %c0_10, %c0_11] : memref<1x8x32xf32, #tpu.memory_space<vmem>>, vector<1x8x32xf32>
      %20 = vector.shape_cast %19 : vector<1x8x32xf32> to vector<8x32xf32>
      %21 = vector.shape_cast %20 : vector<8x32xf32> to vector<8x4x8xf32>
      %22 = tpu.transpose %21, [1, 0, 2] : vector<8x4x8xf32> -> vector<4x8x8xf32>
      "tpu.trace_start"() <{level = 10 : i32, message = "hqd,hkd->hqk"}> : () -> ()
      %cst_12 = arith.constant dense<0.000000e+00> : vector<4x8x8xf32>
      %23 = tpu.matmul %14, %18, %cst_12 {dimension_numbers = #tpu.dot_dimension_numbers<[2], [2], [1], [1], [0, 0, 0, 1, 1, 1], [0], [0]>} : vector<4x8x8xf32>, vector<4x8x8xf32>, vector<4x8x8xf32> -> vector<4x8x8xf32>
      "tpu.trace_stop"() : () -> ()
      %c8_i32 = arith.constant 8 : i32
      %24 = arith.muli %arg1, %c8_i32 : i32
      %25 = tpu.iota {dimensions = array<i32: 1>} : vector<4x8x8xi32>
      %26 = vector.broadcast %24 : i32 to vector<4x8x8xi32>
      %27 = arith.addi %26, %25 : vector<4x8x8xi32>
      %c8_i32_13 = arith.constant 8 : i32
      %28 = arith.muli %arg2, %c8_i32_13 : i32
      %29 = tpu.iota {dimensions = array<i32: 2>} : vector<4x8x8xi32>
      %30 = vector.broadcast %28 : i32 to vector<4x8x8xi32>
      %31 = arith.addi %30, %29 : vector<4x8x8xi32>
      %32 = arith.cmpi sle, %31, %27 : vector<4x8x8xi32>
      %cst_14 = arith.constant -2.38197633E+38 : f32
      %33 = vector.broadcast %cst_14 : f32 to vector<4x8x8xf32>
      %34 = arith.select %32, %23, %33 : vector<4x8x8xi1>, vector<4x8x8xf32>
      %c0_15 = arith.constant 0 : index
      %c0_16 = arith.constant 0 : index
      %c0_17 = arith.constant 0 : index
      %35 = vector.load %arg7[%c0_15, %c0_16, %c0_17] : memref<4x8x1xf32, #tpu.memory_space<vmem>>, vector<4x8x1xf32>
      %cst_18 = arith.constant dense<0xFF800000> : vector<4x8xf32>
      %36 = vector.multi_reduction <maximumf>, %34, %cst_18 [2] : vector<4x8x8xf32> to vector<4x8xf32>
      %37 = vector.shape_cast %36 : vector<4x8xf32> to vector<4x8x1xf32>
      %38 = arith.maximumf %35, %37 : vector<4x8x1xf32>
      %39 = arith.subf %35, %38 : vector<4x8x1xf32>
      %40 = math.exp %39 : vector<4x8x1xf32>
      %41 = vector.broadcast %38 : vector<4x8x1xf32> to vector<4x8x8xf32>
      %42 = arith.subf %34, %41 : vector<4x8x8xf32>
      %43 = math.exp %42 : vector<4x8x8xf32>
      %c0_19 = arith.constant 0 : index
      %c0_20 = arith.constant 0 : index
      %c0_21 = arith.constant 0 : index
      %44 = vector.load %arg8[%c0_19, %c0_20, %c0_21] : memref<4x8x1xf32, #tpu.memory_space<vmem>>, vector<4x8x1xf32>
      %45 = arith.mulf %40, %44 : vector<4x8x1xf32>
      %cst_22 = arith.constant dense<0.000000e+00> : vector<4x8xf32>
      %46 = vector.multi_reduction <add>, %43, %cst_22 [2] : vector<4x8x8xf32> to vector<4x8xf32>
      %47 = vector.shape_cast %46 : vector<4x8xf32> to vector<4x8x1xf32>
      %48 = arith.addf %45, %47 : vector<4x8x1xf32>
      %c0_23 = arith.constant 0 : index
      %c0_24 = arith.constant 0 : index
      %c0_25 = arith.constant 0 : index
      %49 = vector.load %arg8[%c0_23, %c0_24, %c0_25] : memref<4x8x1xf32, #tpu.memory_space<vmem>>, vector<4x8x1xf32>
      tpu.vector_store %arg8[%c0_23, %c0_24, %c0_25], %48 {strides = array<i32>} : memref<4x8x1xf32, #tpu.memory_space<vmem>>, vector<4x8x1xf32>,
      %c0_26 = arith.constant 0 : index
      %c0_27 = arith.constant 0 : index
      %c0_28 = arith.constant 0 : index
      %50 = vector.load %arg9[%c0_26, %c0_27, %c0_28] : memref<4x8x8xf32, #tpu.memory_space<vmem>>, vector<4x8x8xf32>
      %51 = vector.broadcast %40 : vector<4x8x1xf32> to vector<4x8x8xf32>
      %52 = arith.mulf %51, %50 : vector<4x8x8xf32>
      "tpu.trace_start"() <{level = 10 : i32, message = "hqk,hkd->hqd"}> : () -> ()
      %cst_29 = arith.constant dense<0.000000e+00> : vector<4x8x8xf32>
      %53 = tpu.matmul %43, %22, %cst_29 {dimension_numbers = #tpu.dot_dimension_numbers<[2], [1], [1], [2], [0, 0, 0, 1, 1, 2], [0], [0]>} : vector<4x8x8xf32>, vector<4x8x8xf32>, vector<4x8x8xf32> -> vector<4x8x8xf32>
      "tpu.trace_stop"() : () -> ()
      %54 = arith.addf %52, %53 : vector<4x8x8xf32>
      %c0_30 = arith.constant 0 : index
      %c0_31 = arith.constant 0 : index
      %c0_32 = arith.constant 0 : index
      %55 = vector.load %arg9[%c0_30, %c0_31, %c0_32] : memref<4x8x8xf32, #tpu.memory_space<vmem>>, vector<4x8x8xf32>
      tpu.vector_store %arg9[%c0_30, %c0_31, %c0_32], %54 {strides = array<i32>} : memref<4x8x8xf32, #tpu.memory_space<vmem>>, vector<4x8x8xf32>,
      %c0_33 = arith.constant 0 : index
      %c0_34 = arith.constant 0 : index
      %c0_35 = arith.constant 0 : index
      %56 = vector.load %arg7[%c0_33, %c0_34, %c0_35] : memref<4x8x1xf32, #tpu.memory_space<vmem>>, vector<4x8x1xf32>
      tpu.vector_store %arg7[%c0_33, %c0_34, %c0_35], %38 {strides = array<i32>} : memref<4x8x1xf32, #tpu.memory_space<vmem>>, vector<4x8x1xf32>,
    } else {
    }
    %c0_i32_2 = arith.constant 0 : i32
    %6 = arith.cmpi eq, %arg2, %c0_i32_2 : i32
    %7 = arith.extui %6 : i1 to i32
    %c0_i32_3 = arith.constant 0 : i32
    %8 = arith.cmpi ne, %7, %c0_i32_3 : i32
    scf.if %8 {
      %c0 = arith.constant 0 : index
      %c0_4 = arith.constant 0 : index
      %c0_5 = arith.constant 0 : index
      %9 = vector.load %arg8[%c0, %c0_4, %c0_5] : memref<4x8x1xf32, #tpu.memory_space<vmem>>, vector<4x8x1xf32>
      %10 = tpu.reciprocal %9 {approx = true} : vector<4x8x1xf32> -> vector<4x8x1xf32>
      %c0_6 = arith.constant 0 : index
      %c0_7 = arith.constant 0 : index
      %c0_8 = arith.constant 0 : index
      %11 = vector.load %arg9[%c0_6, %c0_7, %c0_8] : memref<4x8x8xf32, #tpu.memory_space<vmem>>, vector<4x8x8xf32>
      %12 = vector.broadcast %10 : vector<4x8x1xf32> to vector<4x8x8xf32>
      %13 = arith.mulf %11, %12 : vector<4x8x8xf32>
      %14 = tpu.transpose %13, [1, 0, 2] : vector<4x8x8xf32> -> vector<8x4x8xf32>
      %15 = vector.shape_cast %14 : vector<8x4x8xf32> to vector<8x32xf32>
      %c0_9 = arith.constant 0 : index
      %c0_10 = arith.constant 0 : index
      %c0_11 = arith.constant 0 : index
      %16 = vector.load %arg6[%c0_9, %c0_10, %c0_11] : memref<1x8x32xf32, #tpu.memory_space<vmem>>, vector<1x8x32xf32>
      %17 = vector.shape_cast %16 : vector<1x8x32xf32> to vector<8x32xf32>
      %18 = vector.shape_cast %15 : vector<8x32xf32> to vector<1x8x32xf32>
      tpu.vector_store %arg6[%c0_9, %c0_10, %c0_11], %18 {strides = array<i32>} : memref<1x8x32xf32, #tpu.memory_space<vmem>>, vector<1x8x32xf32>,
    } else {
    }
    return
  }
  func.func @transform_0(%arg0: i32, %arg1: i32, %arg2: i32) -> (i32, i32, i32) {
    %c0_i32 = arith.constant 0 : i32
    %c0_i32_0 = arith.constant 0 : i32
    return %arg0, %arg1, %c0_i32 : i32, i32, i32
  }
  func.func @transform_1(%arg0: i32, %arg1: i32, %arg2: i32) -> (i32, i32, i32) {
    %c0_i32 = arith.constant 0 : i32
    %c0_i32_0 = arith.constant 0 : i32
    return %arg0, %arg2, %c0_i32 : i32, i32, i32
  }
  func.func @transform_2(%arg0: i32, %arg1: i32, %arg2: i32) -> (i32, i32, i32) {
    %c0_i32 = arith.constant 0 : i32
    %c0_i32_0 = arith.constant 0 : i32
    return %arg0, %arg2, %c0_i32 : i32, i32, i32
  }
  func.func @transform_3(%arg0: i32, %arg1: i32, %arg2: i32) -> (i32, i32, i32) {
    %c0_i32 = arith.constant 0 : i32
    %c0_i32_0 = arith.constant 0 : i32
    return %arg0, %arg1, %c0_i32 : i32, i32, i32
  }
}

module attributes {stable_mosaic.version = 11 : i64} {
  func.func @_linear_kernel(%arg0: i32, %arg1: i32, %arg2: i32, %arg3: memref<16x32xf32, #tpu.memory_space<vmem>>, %arg4: memref<32x32xf32, #tpu.memory_space<vmem>>, %arg5: memref<1x32xf32, #tpu.memory_space<vmem>>, %arg6: memref<16x32xf32, #tpu.memory_space<vmem>>, %arg7: memref<16x32xf32, #tpu.memory_space<vmem>>) attributes {dimension_semantics = [#tpu.dimension_semantics<parallel>, #tpu.dimension_semantics<parallel>, #tpu.dimension_semantics<arbitrary>], iteration_bounds = array<i64: 1, 1, 1>, scalar_prefetch = 0 : i64, scratch_operands = 1 : i64, tpu.core_type = #tpu.core_type<tc>, window_params = [{transform_indices = @transform_0, window_bounds = array<i64: 16, 32>}, {transform_indices = @transform_1, window_bounds = array<i64: 32, 32>}, {transform_indices = @transform_2, window_bounds = array<i64: 1, 32>}, {transform_indices = @transform_3, window_bounds = array<i64: 16, 32>}]} {
    %c0_i32 = arith.constant 0 : i32
    %0 = arith.cmpi eq, %arg2, %c0_i32 : i32
    %1 = arith.extui %0 : i1 to i32
    %c0_i32_0 = arith.constant 0 : i32
    %2 = arith.cmpi ne, %1, %c0_i32_0 : i32
    scf.if %2 {
      %cst_10 = arith.constant 0.000000e+00 : f32
      %12 = vector.broadcast %cst_10 : f32 to vector<16x32xf32>
      %c0_11 = arith.constant 0 : index
      %c0_12 = arith.constant 0 : index
      %13 = vector.load %arg7[%c0_11, %c0_12] : memref<16x32xf32, #tpu.memory_space<vmem>>, vector<16x32xf32>
      tpu.vector_store %arg7[%c0_11, %c0_12], %12 {strides = array<i32>} : memref<16x32xf32, #tpu.memory_space<vmem>>, vector<16x32xf32>,
    } else {
    }
    %c0 = arith.constant 0 : index
    %c0_1 = arith.constant 0 : index
    %3 = vector.load %arg7[%c0, %c0_1] : memref<16x32xf32, #tpu.memory_space<vmem>>, vector<16x32xf32>
    %c0_2 = arith.constant 0 : index
    %c0_3 = arith.constant 0 : index
    %4 = vector.load %arg3[%c0_2, %c0_3] : memref<16x32xf32, #tpu.memory_space<vmem>>, vector<16x32xf32>
    %c0_4 = arith.constant 0 : index
    %c0_5 = arith.constant 0 : index
    %5 = vector.load %arg4[%c0_4, %c0_5] : memref<32x32xf32, #tpu.memory_space<vmem>>, vector<32x32xf32>
    %cst = arith.constant dense<0.000000e+00> : vector<16x32xf32>
    %6 = tpu.matmul %4, %5, %cst {dimension_numbers = #tpu.dot_dimension_numbers<[1], [0], [0], [1], [0, 0, 1, 1], [], []>} : vector<16x32xf32>, vector<32x32xf32>, vector<16x32xf32> -> vector<16x32xf32>
    %7 = arith.addf %3, %6 : vector<16x32xf32>
    %c0_6 = arith.constant 0 : index
    %c0_7 = arith.constant 0 : index
    %8 = vector.load %arg7[%c0_6, %c0_7] : memref<16x32xf32, #tpu.memory_space<vmem>>, vector<16x32xf32>
    tpu.vector_store %arg7[%c0_6, %c0_7], %7 {strides = array<i32>} : memref<16x32xf32, #tpu.memory_space<vmem>>, vector<16x32xf32>,
    %c0_i32_8 = arith.constant 0 : i32
    %9 = arith.cmpi eq, %arg2, %c0_i32_8 : i32
    %10 = arith.extui %9 : i1 to i32
    %c0_i32_9 = arith.constant 0 : i32
    %11 = arith.cmpi ne, %10, %c0_i32_9 : i32
    scf.if %11 {
      %c0_10 = arith.constant 0 : index
      %c0_11 = arith.constant 0 : index
      %12 = vector.load %arg7[%c0_10, %c0_11] : memref<16x32xf32, #tpu.memory_space<vmem>>, vector<16x32xf32>
      %c0_12 = arith.constant 0 : index
      %c0_13 = arith.constant 0 : index
      %13 = vector.load %arg5[%c0_12, %c0_13] : memref<1x32xf32, #tpu.memory_space<vmem>>, vector<1x32xf32>
      %14 = vector.broadcast %13 : vector<1x32xf32> to vector<16x32xf32>
      %15 = arith.addf %12, %14 : vector<16x32xf32>
      %c0_14 = arith.constant 0 : index
      %c0_15 = arith.constant 0 : index
      %16 = vector.load %arg6[%c0_14, %c0_15] : memref<16x32xf32, #tpu.memory_space<vmem>>, vector<16x32xf32>
      tpu.vector_store %arg6[%c0_14, %c0_15], %15 {strides = array<i32>} : memref<16x32xf32, #tpu.memory_space<vmem>>, vector<16x32xf32>,
    } else {
    }
    return
  }
  func.func @transform_0(%arg0: i32, %arg1: i32, %arg2: i32) -> (i32, i32) {
    %c0_i32 = arith.constant 0 : i32
    return %arg0, %arg2 : i32, i32
  }
  func.func @transform_1(%arg0: i32, %arg1: i32, %arg2: i32) -> (i32, i32) {
    %c0_i32 = arith.constant 0 : i32
    return %arg2, %arg1 : i32, i32
  }
  func.func @transform_2(%arg0: i32, %arg1: i32, %arg2: i32) -> (i32, i32) {
    %c0_i32 = arith.constant 0 : i32
    %c0_i32_0 = arith.constant 0 : i32
    return %c0_i32, %arg1 : i32, i32
  }
  func.func @transform_3(%arg0: i32, %arg1: i32, %arg2: i32) -> (i32, i32) {
    %c0_i32 = arith.constant 0 : i32
    return %arg0, %arg1 : i32, i32
  }
}

module attributes {stable_mosaic.version = 11 : i64} {
  func.func @_linear_kernel(%arg0: i32, %arg1: i32, %arg2: i32, %arg3: memref<16x32xf32, #tpu.memory_space<vmem>>, %arg4: memref<32x96xf32, #tpu.memory_space<vmem>>, %arg5: memref<1x96xf32, #tpu.memory_space<vmem>>, %arg6: memref<16x96xf32, #tpu.memory_space<vmem>>, %arg7: memref<16x96xf32, #tpu.memory_space<vmem>>) attributes {dimension_semantics = [#tpu.dimension_semantics<parallel>, #tpu.dimension_semantics<parallel>, #tpu.dimension_semantics<arbitrary>], iteration_bounds = array<i64: 1, 1, 1>, scalar_prefetch = 0 : i64, scratch_operands = 1 : i64, tpu.core_type = #tpu.core_type<tc>, window_params = [{transform_indices = @transform_0, window_bounds = array<i64: 16, 32>}, {transform_indices = @transform_1, window_bounds = array<i64: 32, 96>}, {transform_indices = @transform_2, window_bounds = array<i64: 1, 96>}, {transform_indices = @transform_3, window_bounds = array<i64: 16, 96>}]} {
    %c0_i32 = arith.constant 0 : i32
    %0 = arith.cmpi eq, %arg2, %c0_i32 : i32
    %1 = arith.extui %0 : i1 to i32
    %c0_i32_0 = arith.constant 0 : i32
    %2 = arith.cmpi ne, %1, %c0_i32_0 : i32
    scf.if %2 {
      %cst_10 = arith.constant 0.000000e+00 : f32
      %12 = vector.broadcast %cst_10 : f32 to vector<16x96xf32>
      %c0_11 = arith.constant 0 : index
      %c0_12 = arith.constant 0 : index
      %13 = vector.load %arg7[%c0_11, %c0_12] : memref<16x96xf32, #tpu.memory_space<vmem>>, vector<16x96xf32>
      tpu.vector_store %arg7[%c0_11, %c0_12], %12 {strides = array<i32>} : memref<16x96xf32, #tpu.memory_space<vmem>>, vector<16x96xf32>,
    } else {
    }
    %c0 = arith.constant 0 : index
    %c0_1 = arith.constant 0 : index
    %3 = vector.load %arg7[%c0, %c0_1] : memref<16x96xf32, #tpu.memory_space<vmem>>, vector<16x96xf32>
    %c0_2 = arith.constant 0 : index
    %c0_3 = arith.constant 0 : index
    %4 = vector.load %arg3[%c0_2, %c0_3] : memref<16x32xf32, #tpu.memory_space<vmem>>, vector<16x32xf32>
    %c0_4 = arith.constant 0 : index
    %c0_5 = arith.constant 0 : index
    %5 = vector.load %arg4[%c0_4, %c0_5] : memref<32x96xf32, #tpu.memory_space<vmem>>, vector<32x96xf32>
    %cst = arith.constant dense<0.000000e+00> : vector<16x96xf32>
    %6 = tpu.matmul %4, %5, %cst {dimension_numbers = #tpu.dot_dimension_numbers<[1], [0], [0], [1], [0, 0, 1, 1], [], []>} : vector<16x32xf32>, vector<32x96xf32>, vector<16x96xf32> -> vector<16x96xf32>
    %7 = arith.addf %3, %6 : vector<16x96xf32>
    %c0_6 = arith.constant 0 : index
    %c0_7 = arith.constant 0 : index
    %8 = vector.load %arg7[%c0_6, %c0_7] : memref<16x96xf32, #tpu.memory_space<vmem>>, vector<16x96xf32>
    tpu.vector_store %arg7[%c0_6, %c0_7], %7 {strides = array<i32>} : memref<16x96xf32, #tpu.memory_space<vmem>>, vector<16x96xf32>,
    %c0_i32_8 = arith.constant 0 : i32
    %9 = arith.cmpi eq, %arg2, %c0_i32_8 : i32
    %10 = arith.extui %9 : i1 to i32
    %c0_i32_9 = arith.constant 0 : i32
    %11 = arith.cmpi ne, %10, %c0_i32_9 : i32
    scf.if %11 {
      %c0_10 = arith.constant 0 : index
      %c0_11 = arith.constant 0 : index
      %12 = vector.load %arg7[%c0_10, %c0_11] : memref<16x96xf32, #tpu.memory_space<vmem>>, vector<16x96xf32>
      %c0_12 = arith.constant 0 : index
      %c0_13 = arith.constant 0 : index
      %13 = vector.load %arg5[%c0_12, %c0_13] : memref<1x96xf32, #tpu.memory_space<vmem>>, vector<1x96xf32>
      %14 = vector.broadcast %13 : vector<1x96xf32> to vector<16x96xf32>
      %15 = arith.addf %12, %14 : vector<16x96xf32>
      %c0_14 = arith.constant 0 : index
      %c0_15 = arith.constant 0 : index
      %16 = vector.load %arg6[%c0_14, %c0_15] : memref<16x96xf32, #tpu.memory_space<vmem>>, vector<16x96xf32>
      tpu.vector_store %arg6[%c0_14, %c0_15], %15 {strides = array<i32>} : memref<16x96xf32, #tpu.memory_space<vmem>>, vector<16x96xf32>,
    } else {
    }
    return
  }
  func.func @transform_0(%arg0: i32, %arg1: i32, %arg2: i32) -> (i32, i32) {
    %c0_i32 = arith.constant 0 : i32
    return %arg0, %arg2 : i32, i32
  }
  func.func @transform_1(%arg0: i32, %arg1: i32, %arg2: i32) -> (i32, i32) {
    %c0_i32 = arith.constant 0 : i32
    return %arg2, %arg1 : i32, i32
  }
  func.func @transform_2(%arg0: i32, %arg1: i32, %arg2: i32) -> (i32, i32) {
    %c0_i32 = arith.constant 0 : i32
    %c0_i32_0 = arith.constant 0 : i32
    return %c0_i32, %arg1 : i32, i32
  }
  func.func @transform_3(%arg0: i32, %arg1: i32, %arg2: i32) -> (i32, i32) {
    %c0_i32 = arith.constant 0 : i32
    return %arg0, %arg1 : i32, i32
  }
}

</mosaic_0001>

<bundles_post_ra>
// kernel: causal_self_attention.5
= control target key start
LH: loop header
LB: loop body
LE: loop exit
PB: predicated region body
PF: predicated region fallthrough
CT: control target
= control target key end

     0   :  { %vm19_vm0 = vcmask 261120   ;;  %v204_v6 = vmov 0.0   ;;  %s269_s0 = inlined_call_operand.vmem [shape: f32[16,32], index: 0, kind: input, shape index: {}]   ;;  %s270_s1 = inlined_call_operand.vmem [shape: f32[32,32], index: 1, kind: input, shape index: {}]   ;;  %s271_s2 = inlined_call_operand.vmem [shape: f32[1,32], index: 2, kind: input, shape index: {}]   ;;  %s272_s3 = inlined_call_operand.hbm [shape: f32[16,32], index: 3, kind: output, shape index: {}]  }
   0x1   :  { %v26_v0 = vld [vmem:[%s270_s1] sm:$0xff]  ;;  %v27_v1 = vld [vmem:[%s270_s1 + $0x8] sm:$0xff]  ;;  %v28_v2 = vld [vmem:[%s270_s1 + $0x10] sm:$0xff]  ;;  %21 = vst.msk [vmem:[#allocation2 + $0x8] sm:$0xff] %vm19_vm0, %v204_v6 }
   0x2   :  { %v168_v3 = vpack.c.bf16 %v27_v1, %v26_v0  ;;  %v29_v4 = vld [vmem:[%s270_s1 + $0x18] sm:$0xff]  ;;  %v24_v5 = vld [vmem:[%s269_s0] sm:$0xff]  ;;  %20 = vst.msk [vmem:[#allocation2] sm:$0xff] %vm19_vm0, %v204_v6 }
   0x3   :  { %v172_v7 = vpack.c.bf16 %v29_v4, %v28_v2  ;;  %165 = vmatprep.mubr.msk.f32.mxu0 %vm19_vm0, %v24_v5 }
   0x4   :  { %8 = vsyncpa [#allocation4], 0  ;;  %169 = vmatprep.subr.bf16.mxu0 %v168_v3  ;;  %v25_v8 = vld [vmem:[%s269_s0 + $0x8] sm:$0xff]  ;;  %v150_v15 = vld [vmem:[%s271_s2] ss:$0 sm:$0xff]  ;;  %s205_s25 = smov [#allocation3]  }
   0x5   :  { %171 = vmatpush3.bf16.msra.mxu0 %v168_v3  ;;  %s137_s26 = sshll.u32 %s205_s25, 4  ;;  %s138_s26 = int_to_ptr.vmem [resolvable:$true] %s137_s26 }
   0x6   :  { %173 = vmatprep.subr.bf16.mxu0 %v172_v7  ;;  %s180_s0 = scalar_lea.vmem %s138_s26, 256  ;;  %p185_p1 = scmp.lt.s32.totalorder %s138_s26, %s138_s26 }
   0x7   :  { %p181_p0 = scmp.ne.s32.totalorder %s138_s26, %s180_s0  ;;  %p186_p2 = scmp.lt.s32.totalorder %s180_s0, %s180_s0 }
   0x8   :  { %v23_v9 = vld [vmem:[#allocation2 + $0x8] sm:$0xff] }
   0x9   :  { %175 = vmatpush3.bf16.msra.mxu0 %v172_v7  ;;  %v22_v10 = vld [vmem:[#allocation2] sm:$0xff]  ;;  %p187_p3 = por %p186_p2, %p185_p1 }
   0xb   :  { %p188_p4 = pnand %p187_p3, %p181_p0 }
   0xc   :  { %166 = vmatmul.mubr.msk.f32.vlgmr.msra.gmra.mrb[0].mxu0 %vm19_vm0, %v25_v8 }
  0xdf   :  { %v167_v11 = vpop.f32.mrb[0].mxu0 }
  0xe0   :  { %v113_v12 = vadd.f32 %v167_v11, %v23_v9  ;;  %v103_v13 = vpop.f32.mrb[1].mxu0 }
  0xe1   :  { %v112_v14 = vadd.f32 %v103_v13, %v22_v10 }
  0xe2   :  { %115 = vst.msk [vmem:[#allocation2 + $0x8] sm:$0xff] %vm19_vm0, %v113_v12 }
  0xe3   :  { %114 = vst.msk [vmem:[#allocation2] sm:$0xff] %vm19_vm0, %v112_v14 }
  0xe9   :  { %v120_v16 = vld [vmem:[#allocation2 + $0x8] sm:$0xff] }
  0xea   :  { %v119_v17 = vld [vmem:[#allocation2] sm:$0xff]  ;;  %v129_v18 = vadd.f32 %v150_v15, %v120_v16 }
  0xeb   :  { %v128_v19 = vadd.f32 %v150_v15, %v119_v17 }
  0xec   :  { %131 = vst.msk [vmem:[#allocation3 + $0x8] sm:$0xff] %vm19_vm0, %v129_v18 }
  0xed   :  { %130 = vst.msk [vmem:[#allocation3] sm:$0xff] %vm19_vm0, %v128_v19 }
  0xee   :  { %191 = shalt.err (!%p188_p4)
}
  0xef   :  { %s192_s28 = scalar_lea.hbm %s272_s3, 256 }
  0xf0   :  { %p193_p5 = scmp.ne.s32.totalorder %s272_s3, %s192_s28  ;;  %p196_p6 = scmp.lt.u32.totalorder %s192_s28, %s272_s3 }
  0xf2   :  { %p198_p7 = pnand %p196_p6, %p193_p5 }
  0xf4   :  { %201 = shalt.err (!%p198_p7)
}
  0xf5   :  { %s206_s6 = smov 128   ;;  %s207_s7 = smov 8  }
  0xf6   :  { %143 = dma.vmem_to_hbm [thread:$0]  %s138_s26, 256, %s272_s3, [#allocation4], %s206_s6, %s206_s6, %s207_s7  }
  0xf7   :  { %202 = dma.done.wait [#allocation4], 256  }
  0xf8   :  { %203 = vsyncadd [#allocation4], 4294967040 }
  0xf9   :  { %147 = vsyncpa [#allocation4], 1 }

// kernel: causal_self_attention.3
= control target key start
LH: loop header
LB: loop body
LE: loop exit
PB: predicated region body
PF: predicated region fallthrough
CT: control target
= control target key end

     0   :  { %8 = vsyncpa [#allocation4], 0  ;;  %s311_s0 = inlined_call_operand.hbm [shape: f32[16,32], index: 0, kind: input, shape index: {}]   ;;  %s312_s1 = inlined_call_operand.hbm [shape: f32[32,96], index: 1, kind: input, shape index: {}]   ;;  %s313_s2 = inlined_call_operand.vmem [shape: f32[1,96], index: 2, kind: input, shape index: {}]   ;;  %s314_s3 = inlined_call_operand.vmem [shape: f32[16,96], index: 3, kind: output, shape index: {}]  }
   0x1   :  { %9 = vsyncpa [#allocation6], 0  ;;  %s247_s12 = smov [#allocation3]   ;;  %s199_s16 = scalar_lea.hbm %s311_s0, 256 }
   0x2   :  { %s15_s13 = sshll.u32 %s247_s12, 4  ;;  %p200_p0 = scmp.ne.s32.totalorder %s311_s0, %s199_s16  ;;  %s16_s13 = int_to_ptr.vmem [resolvable:$true] %s15_s13 }
   0x3   :  { %p203_p1 = scmp.lt.u32.totalorder %s199_s16, %s311_s0 }
   0x5   :  { %p205_p2 = pnand %p203_p1, %p200_p0 }
   0x7   :  { %208 = shalt.err (!%p205_p2)
}
   0x8   :  { %s209_s21 = scalar_lea.vmem %s16_s13, 256  ;;  %p214_p4 = scmp.lt.s32.totalorder %s16_s13, %s16_s13 }
   0x9   :  { %p210_p3 = scmp.ne.s32.totalorder %s16_s13, %s209_s21  ;;  %p215_p5 = scmp.lt.s32.totalorder %s209_s21, %s209_s21 }
   0xb   :  { %p216_p6 = por %p215_p5, %p214_p4 }
   0xd   :  { %p217_p7 = pnand %p216_p6, %p210_p3 }
   0xf   :  { %220 = shalt.err (!%p217_p7)
}
  0x10   :  { %s248_s22 = smov 128   ;;  %s249_s23 = smov 8  }
  0x11   :  { %21 = dma.hbm_to_vmem [thread:$0]  %s311_s0, 256, %s16_s13, [#allocation4], %s248_s22, %s248_s22, %s249_s23  }
  0x12   :  { %s250_s26 = smov [#allocation5]   ;;  %s221_s30 = scalar_lea.hbm %s312_s1, 512 }
  0x13   :  { %s27_s27 = sshll.u32 %s250_s26, 4  ;;  %p222_p8 = scmp.ne.s32.totalorder %s312_s1, %s221_s30  ;;  %s28_s27 = int_to_ptr.vmem [resolvable:$true] %s27_s27 }
  0x14   :  { %p225_p9 = scmp.lt.u32.totalorder %s221_s30, %s312_s1 }
  0x16   :  { %p227_p10 = pnand %p225_p9, %p222_p8 }
  0x18   :  { %230 = shalt.err (!%p227_p10)
}
  0x19   :  { %s231_s8 = scalar_lea.vmem %s28_s27, 512  ;;  %p236_p12 = scmp.lt.s32.totalorder %s28_s27, %s28_s27 }
  0x1a   :  { %p232_p11 = scmp.ne.s32.totalorder %s28_s27, %s231_s8  ;;  %p237_p13 = scmp.lt.s32.totalorder %s231_s8, %s231_s8 }
  0x1c   :  { %p238_p0 = por %p237_p13, %p236_p12 }
  0x1e   :  { %p239_p1 = pnand %p238_p0, %p232_p11 }
  0x20   :  { %242 = shalt.err (!%p239_p1)
}
  0x21   :  { %33 = dma.hbm_to_vmem [thread:$0]  %s312_s1, 512, %s28_s27, [#allocation6], %s248_s22, %s248_s22, %s249_s23  }
  0x22   :  { %243 = dma.done.wait [#allocation4], 256  }
  0x23   :  { %244 = vsyncadd [#allocation4], 4294967040 }
  0x24   :  { %245 = dma.done.wait [#allocation6], 512  }
  0x25   :  { %246 = vsyncadd [#allocation6], 4294966784  ;;  %vm46_vm0 = vcmask 785408   ;;  %v251_v0 = vmov 0.0   ;;  %vm57_vm1 = vcmask 261120   ;;  %v53_v1 = vld [vmem:[#allocation5] sm:$0xff] }
  0x26   :  { %48 = vst.msk [vmem:[#allocation2 + $0x8] sm:$0xff] %vm46_vm0, %v251_v0  ;;  %47 = vst.msk [vmem:[#allocation2] sm:$0xff] %vm46_vm0, %v251_v0  ;;  %v54_v2 = vld [vmem:[#allocation5 + $0x8] sm:$0xff]  ;;  %v55_v3 = vld [vmem:[#allocation5 + $0x10] sm:$0xff] }
  0x27   :  { %v186_v4 = vpack.c.bf16 %v54_v2, %v53_v1  ;;  %v56_v5 = vld [vmem:[#allocation5 + $0x18] sm:$0xff]  ;;  %v51_v6 = vld [vmem:[#allocation3] sm:$0xff]  ;;  %v168_v15 = vld [vmem:[%s313_s2] ss:$0 sm:$0xff] }
  0x28   :  { %v190_v7 = vpack.c.bf16 %v56_v5, %v55_v3  ;;  %183 = vmatprep.mubr.msk.f32.mxu0 %vm57_vm1, %v51_v6  ;;  %v52_v8 = vld [vmem:[#allocation3 + $0x8] sm:$0xff] }
  0x29   :  { %187 = vmatprep.subr.bf16.mxu0 %v186_v4 }
  0x2a   :  { %189 = vmatpush3.bf16.msra.mxu0 %v186_v4 }
  0x2b   :  { %191 = vmatprep.subr.bf16.mxu0 %v190_v7 }
  0x2d   :  { %v50_v9 = vld [vmem:[#allocation2 + $0x8] sm:$0xff]  ;;  %v49_v10 = vld [vmem:[#allocation2] sm:$0xff] }
  0x2e   :  { %193 = vmatpush3.bf16.msra.mxu0 %v190_v7 }
  0x31   :  { %184 = vmatmul.mubr.msk.f32.vlgmr.msra.gmra.mrb[0].mxu0 %vm57_vm1, %v52_v8 }
 0x104   :  { %v185_v11 = vpop.f32.mrb[0].mxu0 }
 0x105   :  { %v140_v12 = vadd.f32 %v185_v11, %v50_v9  ;;  %v130_v13 = vpop.f32.mrb[1].mxu0 }
 0x106   :  { %v139_v14 = vadd.f32 %v130_v13, %v49_v10 }
 0x107   :  { %143 = vst.msk [vmem:[#allocation2 + $0x8] sm:$0xff] %vm46_vm0, %v140_v12 }
 0x108   :  { %142 = vst.msk [vmem:[#allocation2] sm:$0xff] %vm46_vm0, %v139_v14 }
 0x10e   :  { %v148_v16 = vld [vmem:[#allocation2 + $0x8] sm:$0xff] }
 0x10f   :  { %v157_v17 = vadd.f32 %v168_v15, %v148_v16  ;;  %v147_v18 = vld [vmem:[#allocation2] sm:$0xff] }
 0x110   :  { %v156_v19 = vadd.f32 %v168_v15, %v147_v18 }
 0x111   :  { %159 = vst.msk [vmem:[%s314_s3 + $0x8] sm:$0xff] %vm46_vm0, %v157_v17 }
 0x112   :  { %158 = vst.msk [vmem:[%s314_s3] sm:$0xff] %vm46_vm0, %v156_v19 }
 0x113   :  { %164 = vsyncpa [#allocation4], 1 }
 0x114   :  { %165 = vsyncpa [#allocation6], 1 }

// kernel: causal_self_attention.4
= control target key start
LH: loop header
LB: loop body
LE: loop exit
PB: predicated region body
PF: predicated region fallthrough
CT: control target
= control target key end

     0   :  { %s1976_s12 = smov 0   ;;  %s1978_s13 = smov 0   ;;  %s2246_s0 = inlined_call_operand.vmem [shape: f32[2,8,32], index: 0, kind: input, shape index: {}]   ;;  %s2247_s1 = inlined_call_operand.vmem [shape: f32[2,8,32], index: 1, kind: input, shape index: {}]   ;;  %s2248_s2 = inlined_call_operand.vmem [shape: f32[2,8,32], index: 2, kind: input, shape index: {}]   ;;  %s2249_s3 = inlined_call_operand.vmem [shape: f32[2,8,32], index: 3, kind: output, shape index: {}]  }
   0x1   :  { %s1980_s14 = smov 0  }
   0x2 LB: > { %s32_s15 = sadd.s32 1, %s1938_s13  ;;  %p1775_p0 = scmp.ge.s32.totalorder %s1942_s14, 1  ;;  %s1942_s14 = sphi %s1980_s14, %s13_s14   ;;  %s1938_s13 = sphi %s1978_s13, %s2251_s13   ;;  %s1934_s12 = sphi %s1976_s12, %s2250_s12  }
   0x3   : > { %p34_p1 = scmp.ge.s32.totalorder %s32_s15, 2  ;;  %p190_p2 = scmp.lt.s32.totalorder %s1942_s14, 3 }
   0x5   : > { %s2253_s15 = smov (%p34_p1, %s32_s15), 0  ;;  %p191_p3 = pnand %p1775_p0, %p190_p2 }
   0x6   : > { %p232_p4 = scmp.lt.s32.totalorder (!%p191_p3), %s1934_s12, 1  ;;  %s1944_s23 = smov (!%p191_p3), 104   ;;  %vm273_vm0 = vcmask (!%p191_p3), 64512   ;;  %v1947_v3 = vmov (!%p191_p3), 0.0   ;;  %vm1948_vm1 = vmmov (!%p191_p3), 0   ;;  %v299_v6 = vlaneseq (!%p191_p3) }
   0x7   : > { %194 = sbr.rel (%p191_p3) target bundleno = 1115 (0x45b), region = 32  ;;  %s1945_s24 = smov (!%p191_p3), 120   ;;  %1818 = vmatprep.subr.mxu0 (!%p191_p3), %v1947_v3  ;;  %1823 = vmatprep.subr.mxu1 (!%p191_p3), %v1947_v3  ;;  %274 = vst.msk [vmem:[#allocation4] sm:$0xff] (!%p191_p3), %vm273_vm0, %v1947_v3  ;;  %275 = vst.msk [vmem:[#allocation4 + $0x8] sm:$0xff] (!%p191_p3), %vm273_vm0, %v1947_v3  ;;  %v1949_v4 = vmov (!%p191_p3), 1983009808  }
   0x8   : > { %s1946_s25 = smov (!%p191_p3), 112   ;;  %276 = vst.msk [vmem:[#allocation4 + $0x10] sm:$0xff] (!%p191_p3), %vm273_vm0, %v1947_v3  ;;  %277 = vst.msk [vmem:[#allocation4 + $0x18] sm:$0xff] (!%p191_p3), %vm273_vm0, %v1947_v3  ;;  %1820 = vmatprep.mubr.msk.f32.mxu0 (!%p191_p3), %vm1948_vm1, %v1947_v3  ;;  %1825 = vmatprep.mubr.msk.f32.mxu1 (!%p191_p3), %vm1948_vm1, %v1947_v3  ;;  %v297_v5 = vunpack.c.l.s4 (!%p191_p3), %v1949_v4  ;;  %v1950_v7 = vmov (!%p191_p3), 1934713408   ;;  %v2025_v10 = vshrl.u32 (!%p191_p3), %v299_v6, 7 }
   0x9   : > { %v329_v8 = vunpack.c.l.s4 (!%p191_p3), %v1950_v7  ;;  %vm264_vm2 = vcmask (!%p191_p3), 7168   ;;  %s1953_s29 = smov (!%p191_p3), 16   ;;  %s1954_s30 = smov (!%p191_p3), 8   ;;  %vm1658_vm4 = vcmask (!%p191_p3), 130048   ;;  %vm1660_vm5 = vcmask (!%p191_p3), 195584  }
   0xa   : > { %v298_v9 = vunpack.c.0.s8 (!%p191_p3), %v297_v5  ;;  %269 = vst.msk [vmem:[#allocation3] sm:$0xff] (!%p191_p3), %vm264_vm2, %v1947_v3  ;;  %270 = vst.msk [vmem:[#allocation3 + $0x8] sm:$0xff] (!%p191_p3), %vm264_vm2, %v1947_v3  ;;  %s1955_s4 = smov (!%p191_p3), 24   ;;  %vm1662_vm6 = vcmask (!%p191_p3), 261120  }
   0xb   : > { %v330_v13 = vunpack.c.0.s8 (!%p191_p3), %v329_v8  ;;  %271 = vst.msk [vmem:[#allocation3 + $0x10] sm:$0xff] (!%p191_p3), %vm264_vm2, %v1947_v3  ;;  %272 = vst.msk [vmem:[#allocation3 + $0x18] sm:$0xff] (!%p191_p3), %vm264_vm2, %v1947_v3 }
   0xc   : > { %v2028_v14 = vsub.s32 (!%p191_p3), %v298_v9, %v2025_v10 }
   0xd   : > { %v2031_v21 = vsub.s32 (!%p191_p3), %v330_v13, %v2025_v10 }
   0xe   : > { %s2255_s12 = smov (!%p232_p4, %s1934_s12), 1 }
   0xf   : > { %s1994_s16 = sshll.u32 %s2255_s12, 3 }
  0x10   : > { %s245_s19 = scalar_lea.vmem %s2247_s1, %s1994_s16  ;;  %s238_s22 = scalar_lea.vmem %s2246_s0, %s1994_s16 }
  0x11   : > { %v430_v0 = vld [vmem:[%s245_s19] sm:$0xff]  ;;  %s252_s28 = scalar_lea.vmem %s2248_s2, %s1994_s16  ;;  %s259_s7 = scalar_lea.vmem %s2249_s3, %s1994_s16 }
  0x12   : > { %v282_v1 = vld [vmem:[%s238_s22] sm:$0xff]  ;;  %438 = vrot.lane.b32.xlu1 %v430_v0, %s1944_s23  ;;  %432 = vrot.lane.b32.xlu0 %v430_v0, %s1945_s24 }
  0x13   : > { %v283_v2 = vmul.f32 0.35355338, %v282_v1 }
  0x16   : > { %435 = vrot.lane.b32.xlu0 %v430_v0, %s1946_s25  ;;  %285 = vrot.lane.b32.xlu1 %v283_v2, %s1945_s24 }
  0x1a   : > { %288 = vrot.lane.b32.xlu0 %v283_v2, %s1946_s25  ;;  %291 = vrot.lane.b32.xlu1 %v283_v2, %s1944_s23 }
  0x84   : > { %v439_v11 = vpop.permute.xlu1 %438  ;;  %v433_v12 = vpop.permute.xlu0 %432 }
  0x85   : > { %v457_v15 = vcombine.low %v433_v12, %v439_v11  ;;  %v458_v16 = vcombine.high %v433_v12, %v439_v11 }
  0x87   : > { %v465_v22 = vrot.slane %v457_v15, %v2028_v14  ;;  %v472_v23 = vrot.slane %v458_v16, %v2028_v14 }
  0x88   : > { %v436_v17 = vpop.permute.xlu0 %435  ;;  %v286_v18 = vpop.permute.xlu1 %285 }
  0x89   : > { %v441_v19 = vcombine.low %v430_v0, %v436_v17  ;;  %v442_v20 = vcombine.high %v430_v0, %v436_v17 }
  0x8b   : > { %v449_v24 = vrot.slane %v441_v19, %v2028_v14  ;;  %v456_v25 = vrot.slane %v442_v20, %v2028_v14 }
  0x8c   : > { %v289_v26 = vpop.permute.xlu0 %288  ;;  %v292_v27 = vpop.permute.xlu1 %291 }
  0x8d   : > { %v473_v28 = vcombine.low %v449_v24, %v465_v22  ;;  %v474_v29 = vcombine.high %v449_v24, %v465_v22  ;;  %v489_v30 = vcombine.low %v456_v25, %v472_v23  ;;  %v490_v31 = vcombine.high %v456_v25, %v472_v23 }
  0x8e   : > { %v294_v32 = vcombine.low %v283_v2, %v289_v26  ;;  %v295_v33 = vcombine.high %v283_v2, %v289_v26  ;;  %v310_v34 = vcombine.low %v286_v18, %v292_v27  ;;  %v311_v35 = vcombine.high %v286_v18, %v292_v27 }
  0x8f   : > { %v481_v36 = vrot.slane %v473_v28, %v2031_v21  ;;  %v488_v37 = vrot.slane %v474_v29, %v2031_v21  ;;  %v497_v38 = vrot.slane %v489_v30, %v2031_v21  ;;  %v504_v39 = vrot.slane %v490_v31, %v2031_v21 }
  0x90   : > { %v302_v40 = vrot.slane %v294_v32, %v2028_v14  ;;  %v309_v41 = vrot.slane %v295_v33, %v2028_v14  ;;  %v318_v42 = vrot.slane %v310_v34, %v2028_v14  ;;  %v325_v43 = vrot.slane %v311_v35, %v2028_v14 }
  0x91   : > { %v509_v44 = vcombine.low %v481_v36, %v488_v37  ;;  %v1782_v45 = vcombine.high %v481_v36, %v488_v37  ;;  %v525_v46 = vcombine.low %v497_v38, %v504_v39  ;;  %v1783_v47 = vcombine.high %v497_v38, %v504_v39 }
  0x92   : > { %v326_v48 = vcombine.low %v302_v40, %v318_v42  ;;  %v327_v49 = vcombine.high %v302_v40, %v318_v42  ;;  %v342_v50 = vcombine.low %v309_v41, %v325_v43  ;;  %v343_v51 = vcombine.high %v309_v41, %v325_v43 }
  0x93   : > { %v516_v52 = vrot.slane %v509_v44, %v2028_v14  ;;  %v524_v53 = vrot.slane %v1782_v45, %v2028_v14  ;;  %v532_v54 = vrot.slane %v525_v46, %v2028_v14  ;;  %v540_v55 = vrot.slane %v1783_v47, %v2028_v14 }
  0x94   : > { %v334_v56 = vrot.slane %v326_v48, %v2031_v21  ;;  %v341_v57 = vrot.slane %v327_v49, %v2031_v21  ;;  %v350_v58 = vrot.slane %v342_v50, %v2031_v21  ;;  %v357_v59 = vrot.slane %v343_v51, %v2031_v21 }
  0x95   : > { %v541_v60 = vcombine.low %v516_v52, %v524_v53  ;;  %v557_v61 = vcombine.low %v532_v54, %v540_v55  ;;  %v542_v2 = vcombine.high %v516_v52, %v524_v53  ;;  %v558_v5 = vcombine.high %v532_v54, %v540_v55 }
  0x96   : > { %v362_v62 = vcombine.low %v334_v56, %v341_v57  ;;  %v1780_v63 = vcombine.high %v334_v56, %v341_v57  ;;  %v378_v0 = vcombine.low %v350_v58, %v357_v59  ;;  %v1781_v1 = vcombine.high %v350_v58, %v357_v59 }
  0x97   : > { %v549_v4 = vrot.slane %v541_v60, %v2031_v21  ;;  %v565_v7 = vrot.slane %v557_v61, %v2031_v21  ;;  %v556_v20 = vrot.slane %v542_v2, %v2031_v21  ;;  %v572_v22 = vrot.slane %v558_v5, %v2031_v21  ;;  %v577_v60 = vld [vmem:[%s252_s28] sm:$0xff] }
  0x98   : > { %v369_v8 = vrot.slane %v362_v62, %v2028_v14  ;;  %v377_v9 = vrot.slane %v1780_v63, %v2028_v14  ;;  %v385_v11 = vrot.slane %v378_v0, %v2028_v14  ;;  %v393_v12 = vrot.slane %v1781_v1, %v2028_v14 }
  0x99   : > { %v573_v13 = vcombine.low %v549_v4, %v565_v7  ;;  %v574_v15 = vcombine.high %v549_v4, %v565_v7  ;;  %v575_v29 = vcombine.low %v556_v20, %v572_v22  ;;  %v576_v30 = vcombine.high %v556_v20, %v572_v22 }
  0x9a   : > { %v395_v16 = vcombine.high %v369_v8, %v377_v9  ;;  %v411_v17 = vcombine.high %v385_v11, %v393_v12  ;;  %v394_v18 = vcombine.low %v369_v8, %v377_v9  ;;  %v410_v19 = vcombine.low %v385_v11, %v393_v12 }
  0x9b   : > { %1819 = vmatpush3.xpose.msk.msra.mxu0 %vm273_vm0, %v573_v13  ;;  %1824 = vmatpush3.xpose.msk.msra.mxu1 %vm273_vm0, %v574_v15  ;;  %v1951_v33 = vmov -inf   ;;  %v1036_v34 = vand.u32 127, %v299_v6  ;;  %v1952_v50 = vmov 0  }
  0x9c   : > { %1828 = vmatprep.subr.mxu0 %v1947_v3  ;;  %1833 = vmatprep.subr.mxu1 %v1947_v3  ;;  %v402_v23 = vrot.slane %v394_v18, %v2031_v21  ;;  %v418_v24 = vrot.slane %v410_v19, %v2031_v21  ;;  %v409_v27 = vrot.slane %v395_v16, %v2031_v21 }
  0x9d   : > { %v425_v28 = vrot.slane %v411_v17, %v2031_v21  ;;  %266 = vst.msk [vmem:[#allocation2 + $0x8] sm:$0xff] %vm264_vm2, %v1951_v33  ;;  %265 = vst.msk [vmem:[#allocation2] sm:$0xff] %vm264_vm2, %v1951_v33  ;;  %vm1039_vm3 = vcmp.le.s32.totalorder %v1036_v34, %v2025_v10  ;;  %1895 = vset.pattern.permute.xlu0 %v1952_v50  ;;  %1894 = vset.pattern.permute.xlu1 %v1952_v50 }
  0x9e   : > { %v426_v25 = vcombine.low %v402_v23, %v418_v24  ;;  %v427_v26 = vcombine.high %v402_v23, %v418_v24  ;;  %267 = vst.msk [vmem:[#allocation2 + $0x10] sm:$0xff] %vm264_vm2, %v1951_v33  ;;  %268 = vst.msk [vmem:[#allocation2 + $0x18] sm:$0xff] %vm264_vm2, %v1951_v33 }
  0x9f   : > { %v428_v31 = vcombine.low %v409_v27, %v425_v28  ;;  %v429_v32 = vcombine.high %v409_v27, %v425_v28 }
  0xa0   : > { %1821 = vmatmul.mubr.msk.f32.vlgmr.msra.gmra.mrb[0].mxu0 %vm273_vm0, %v426_v25  ;;  %1826 = vmatmul.mubr.msk.f32.vlgmr.msra.gmra.mrb[0].mxu1 %vm273_vm0, %v427_v26 }
  0xa1   : > { %1829 = vmatpush3.xpose.msk.msra.mxu0 %vm273_vm0, %v575_v29  ;;  %1834 = vmatpush3.xpose.msk.msra.mxu1 %vm273_vm0, %v576_v30 }
  0xa2   : > { %1830 = vmatprep.mubr.msk.f32.mxu0 %vm1948_vm1, %v1947_v3  ;;  %1835 = vmatprep.mubr.msk.f32.mxu1 %vm1948_vm1, %v1947_v3 }
  0xa3   : > { %1838 = vmatprep.subr.mxu0 %v1947_v3  ;;  %1843 = vmatprep.subr.mxu1 %v1947_v3 }
  0xa4   : > { %1831 = vmatmul.mubr.msk.f32.vlgmr.msra.gmra.mrb[2].mxu0 %vm273_vm0, %v428_v31  ;;  %1836 = vmatmul.mubr.msk.f32.vlgmr.msra.gmra.mrb[2].mxu1 %vm273_vm0, %v429_v32  ;;  %v2117_v51 = vld [vmem:[#allocation2 + $0x8] sm:$0xff]  ;;  %v2119_v52 = vld [vmem:[#allocation2] sm:$0xff] }
  0xa5   : > { %1840 = vmatprep.mubr.msk.f32.mxu0 %vm1948_vm1, %v1947_v3  ;;  %1845 = vmatprep.mubr.msk.f32.mxu1 %vm1948_vm1, %v1947_v3  ;;  %v2131_v56 = vld [vmem:[#allocation2 + $0x10] sm:$0xff]  ;;  %v2146_v62 = vld [vmem:[#allocation2 + $0x18] sm:$0xff] }
 0x173   : > { %v797_v35 = vpop.f32.mrb[0].mxu0  ;;  %v873_v36 = vpop.f32.mrb[0].mxu1 }
 0x174   : > { %v1040_v37 = vsel %vm1039_vm3, %v797_v35, -2.3819763e+38  ;;  %v1041_v38 = vsel %vm1039_vm3, %v873_v36, -2.3819763e+38  ;;  %v1822_v39 = vpop.f32.mrb[1].mxu0  ;;  %v1827_v40 = vpop.f32.mrb[1].mxu1 }
 0x175   : > { %v1051_v41 = vsel %vm273_vm0, %v1041_v38, -inf  ;;  %v1048_v42 = vsel %vm273_vm0, %v1040_v37, -inf }
 0x176   : > { %1052 = vmax.xlane.f32.xlu1 %v1051_v41  ;;  %1049 = vmax.xlane.f32.xlu0 %v1048_v42 }
 0x177   : > { %v949_v43 = vpop.f32.mrb[2].mxu0  ;;  %v1025_v6 = vpop.f32.mrb[2].mxu1 }
 0x178   : > { %v2107_v44 = vsel %vm1039_vm3, %v949_v43, -2.3819763e+38  ;;  %v1832_v45 = vpop.f32.mrb[3].mxu0  ;;  %v1837_v46 = vpop.f32.mrb[3].mxu1  ;;  %v2113_v48 = vsel %vm1039_vm3, %v1025_v6, -2.3819763e+38 }
 0x179   : > { %v1054_v47 = vsel %vm273_vm0, %v2107_v44, -inf  ;;  %v1057_v49 = vsel %vm273_vm0, %v2113_v48, -inf }
 0x17a   : > { %1055 = vmax.xlane.f32.xlu0 %v1054_v47 }
 0x17e   : > { %1058 = vmax.xlane.f32.xlu0 %v1057_v49 }
 0x203   : > { %v1053_v53 = vpop.xlane.xlu1 %1052  ;;  %v1050_v54 = vpop.xlane.xlu0 %1049 }
 0x204   : > { %v2122_v55 = vmax.f32 %v2117_v51, %v1053_v53  ;;  %v2125_v10 = vmax.f32 %v2119_v52, %v1050_v54 }
 0x206   : > { %v1065_v57 = vsub.f32 %v2117_v51, %v2122_v55  ;;  %1466 = vst.msk [vmem:[#allocation2 + $0x8] sm:$0xff] %vm264_vm2, %v2122_v55  ;;  %v1064_v58 = vsub.f32 %v2119_v52, %v2125_v10  ;;  %1465 = vst.msk [vmem:[#allocation2] sm:$0xff] %vm264_vm2, %v2125_v10  ;;  %1078 = vperm.xlu1 %1894, %v2125_v10   ;;  %1083 = vperm.xlu0 %1895, %v2122_v55  }
 0x207   : > { %v1056_v59 = vpop.xlane.xlu0 %1055 }
 0x208   : > { %v2144_v61 = vmax.f32 %v2131_v56, %v1056_v59 }
 0x20a   : > { %v1066_v63 = vsub.f32 %v2131_v56, %v2144_v61  ;;  %1467 = vst.msk [vmem:[#allocation2 + $0x10] sm:$0xff] %vm264_vm2, %v2144_v61  ;;  %579 = vrot.lane.b32.xlu1 %v577_v60, %s1945_s24 }
 0x20b   : > { %v1059_v0 = vpop.xlane.xlu0 %1058 }
 0x20c   : > { %v2154_v1 = vmax.f32 %v2146_v62, %v1059_v0  ;;  %v1068_v0 = vmul.f32 1.442695, %v1064_v58 }
 0x20e   : > { %v1067_v2 = vsub.f32 %v2146_v62, %v2154_v1  ;;  %1468 = vst.msk [vmem:[#allocation2 + $0x18] sm:$0xff] %vm264_vm2, %v2154_v1  ;;  %582 = vrot.lane.b32.xlu1 %v577_v60, %s1946_s25 }
 0x212   : > { %585 = vrot.lane.b32.xlu1 %v577_v60, %s1944_s23 }
 0x216   : > { %1088 = vperm.xlu1 %1894, %v2144_v61  }
 0x21a   : > { %1093 = vperm.xlu1 %1894, %v2154_v1  }
 0x285   : > { %v1079_v4 = vpop.permute.xlu1 %1078  ;;  %v1084_v5 = vpop.permute.xlu0 %1083 }
 0x286   : > { %v1096_v7 = vsub.f32 %v1040_v37, %v1079_v4  ;;  %v1097_v8 = vsub.f32 %v1041_v38, %v1084_v5 }
 0x288   : > { %v1100_v9 = vmul.f32 1.442695, %v1096_v7  ;;  %v1102_v11 = vmul.f32 1.442695, %v1097_v8 }
 0x289   : > { %v580_v12 = vpop.permute.xlu1 %579 }
 0x28a   : > { %1896 = vpow2.f32 %v1100_v9 }
 0x28b   : > { %1898 = vpow2.f32 %v1102_v11  ;;  %v1074_v11 = vmul.f32 1.442695, %v1067_v2 }
 0x28d   : > { %v583_v13 = vpop.permute.xlu1 %582 }
 0x28e   : > { %v588_v15 = vcombine.low %v577_v60, %v583_v13  ;;  %v589_v16 = vcombine.high %v577_v60, %v583_v13  ;;  %v1070_v13 = vmul.f32 1.442695, %v1065_v57 }
 0x290   : > { %v596_v22 = vrot.slane %v588_v15, %v2028_v14  ;;  %v603_v23 = vrot.slane %v589_v16, %v2028_v14  ;;  %v1072_v16 = vmul.f32 1.442695, %v1066_v63  ;;  %v1110_v63 = vld [vmem:[#allocation3 + $0x10] sm:$0xff] }
 0x291   : > { %v586_v17 = vpop.permute.xlu1 %585 }
 0x292   : > { %v604_v18 = vcombine.low %v580_v12, %v586_v17  ;;  %v605_v19 = vcombine.high %v580_v12, %v586_v17 }
 0x294   : > { %v1897_v20 = vpop.eup %1896  ;;  %v612_v24 = vrot.slane %v604_v18, %v2028_v14  ;;  %v619_v25 = vrot.slane %v605_v19, %v2028_v14  ;;  %v1108_v18 = vld [vmem:[#allocation3] sm:$0xff]  ;;  %v1109_v19 = vld [vmem:[#allocation3 + $0x8] sm:$0xff] }
 0x295   : > { %v1899_v26 = vpop.eup %1898  ;;  %v1089_v27 = vpop.permute.xlu1 %1088  ;;  %v1116_v28 = vsel %vm273_vm0, %v1897_v20, 0.0 }
 0x296   : > { %v620_v29 = vcombine.low %v596_v22, %v612_v24  ;;  %v621_v30 = vcombine.high %v596_v22, %v612_v24  ;;  %v636_v31 = vcombine.low %v603_v23, %v619_v25  ;;  %v637_v32 = vcombine.high %v603_v23, %v619_v25  ;;  %1117 = vadd.xlane.f32.xlu1 %v1116_v28 }
 0x297   : > { %v1098_v33 = vsub.f32 %v2107_v44, %v1089_v27  ;;  %v1119_v34 = vsel %vm273_vm0, %v1899_v26, 0.0 }
 0x298   : > { %v628_v35 = vrot.slane %v620_v29, %v2031_v21  ;;  %v635_v36 = vrot.slane %v621_v30, %v2031_v21  ;;  %v644_v37 = vrot.slane %v636_v31, %v2031_v21  ;;  %v651_v38 = vrot.slane %v637_v32, %v2031_v21  ;;  %1120 = vadd.xlane.f32.xlu0 %v1119_v34 }
 0x299   : > { %v1104_v39 = vmul.f32 1.442695, %v1098_v33  ;;  %v1094_v40 = vpop.permute.xlu1 %1093 }
 0x29a   : > { %v656_v41 = vcombine.low %v628_v35, %v635_v36  ;;  %v1784_v42 = vcombine.high %v628_v35, %v635_v36  ;;  %v672_v43 = vcombine.low %v644_v37, %v651_v38  ;;  %v1785_v6 = vcombine.high %v644_v37, %v651_v38 }
 0x29b   : > { %1900 = vpow2.f32 %v1104_v39  ;;  %v1099_v44 = vsub.f32 %v2113_v48, %v1094_v40  ;;  %v1137_v39 = vld [vmem:[#allocation4] sm:$0xff]  ;;  %v1138_v40 = vld [vmem:[#allocation4 + $0x8] sm:$0xff] }
 0x29c   : > { %v663_v45 = vrot.slane %v656_v41, %v2028_v14  ;;  %v671_v46 = vrot.slane %v1784_v42, %v2028_v14  ;;  %v679_v47 = vrot.slane %v672_v43, %v2028_v14  ;;  %v687_v49 = vrot.slane %v1785_v6, %v2028_v14 }
 0x29d   : > { %v1106_v50 = vmul.f32 1.442695, %v1099_v44  ;;  %v1139_v44 = vld [vmem:[#allocation4 + $0x10] sm:$0xff] }
 0x29e   : > { %v688_v53 = vcombine.low %v663_v45, %v671_v46  ;;  %v704_v54 = vcombine.low %v679_v47, %v687_v49  ;;  %v689_v59 = vcombine.high %v663_v45, %v671_v46  ;;  %v705_v60 = vcombine.high %v679_v47, %v687_v49  ;;  %v1140_v47 = vld [vmem:[#allocation4 + $0x18] sm:$0xff] }
 0x29f   : > { %1902 = vpow2.f32 %v1106_v50 }
 0x2a0   : > { %v696_v48 = vrot.slane %v688_v53, %v2031_v21  ;;  %v712_v4 = vrot.slane %v704_v54, %v2031_v21  ;;  %v703_v5 = vrot.slane %v689_v59, %v2031_v21  ;;  %v719_v7 = vrot.slane %v705_v60, %v2031_v21 }
 0x2a1   : > { %1904 = vpow2.f32 %v1068_v0 }
 0x2a2   : > { %v720_v8 = vcombine.low %v696_v48, %v712_v4  ;;  %v721_v9 = vcombine.high %v696_v48, %v712_v4  ;;  %v722_v10 = vcombine.low %v703_v5, %v719_v7  ;;  %v723_v12 = vcombine.high %v703_v5, %v719_v7 }
 0x2a3   : > { %1906 = vpow2.f32 %v1074_v11 }
 0x2a4   : > { %1839 = vmatpush3.msra.mxu0 %v720_v8  ;;  %1844 = vmatpush3.msra.mxu1 %v721_v9  ;;  %1908 = vpow2.f32 %v1070_v13 }
 0x2a5   : > { %v1901_v52 = vpop.eup %1900  ;;  %1841 = vmatmul.mubr.msk.f32.vlgmr.msra.gmra.mrb[4].mxu0 %vm273_vm0, %v1897_v20  ;;  %1846 = vmatmul.mubr.msk.f32.vlgmr.msra.gmra.mrb[4].mxu1 %vm273_vm0, %v1899_v26  ;;  %1910 = vpow2.f32 %v1072_v16  ;;  %v1111_v26 = vld [vmem:[#allocation3 + $0x18] sm:$0xff] }
 0x2a6   : > { %1848 = vmatprep.subr.mxu0 %v1947_v3  ;;  %1853 = vmatprep.subr.mxu1 %v1947_v3  ;;  %v1122_v58 = vsel %vm273_vm0, %v1901_v52, 0.0 }
 0x2a7   : > { %1849 = vmatpush3.msra.mxu0 %v722_v10  ;;  %1123 = vadd.xlane.f32.xlu1 %v1122_v58 }
 0x2a8   : > { %1854 = vmatpush3.msra.mxu1 %v723_v12  ;;  %1850 = vmatprep.mubr.msk.f32.mxu0 %vm1948_vm1, %v1947_v3 }
 0x2a9   : > { %v1903_v62 = vpop.eup %1902  ;;  %1855 = vmatprep.mubr.msk.f32.mxu1 %vm1948_vm1, %v1947_v3  ;;  %1851 = vmatmul.mubr.msk.f32.vlgmr.msra.gmra.mrb[6].mxu0 %vm273_vm0, %v1901_v52 }
 0x2aa   : > { %1856 = vmatmul.mubr.msk.f32.vlgmr.msra.gmra.mrb[6].mxu1 %vm273_vm0, %v1903_v62  ;;  %v1125_v1 = vsel %vm273_vm0, %v1903_v62, 0.0 }
 0x2ab   : > { %1126 = vadd.xlane.f32.xlu1 %v1125_v1  ;;  %v1905_v2 = vpop.eup %1904 }
 0x2ac   : > { %v1112_v20 = vmul.f32 %v1905_v2, %v1108_v18 }
 0x2ad   : > { %v1907_v15 = vpop.eup %1906 }
 0x2ae   : > { %1143 = vperm.xlu0 %1895, %v1905_v2   ;;  %v1909_v3 = vpop.eup %1908  ;;  %v1115_v28 = vmul.f32 %v1907_v15, %v1111_v26 }
 0x2af   : > { %v1911_v17 = vpop.eup %1910  ;;  %v1113_v51 = vmul.f32 %v1909_v3, %v1109_v19 }
 0x2b0   : > { %v1114_v24 = vmul.f32 %v1911_v17, %v1110_v63 }
 0x2b2   : > { %1158 = vperm.xlu0 %1895, %v1907_v15  }
 0x2bc   : > { %1148 = vperm.xlu1 %1894, %v1909_v3  }
 0x2c0   : > { %1153 = vperm.xlu1 %1894, %v1911_v17  }
 0x323   : > { %v1118_v22 = vpop.xlane.xlu1 %1117 }
 0x324   : > { %v1128_v23 = vadd.f32 %v1118_v22, %v1112_v20 }
 0x325   : > { %v1121_v55 = vpop.xlane.xlu0 %1120 }
 0x326   : > { %1133 = vst.msk [vmem:[#allocation3] sm:$0xff] %vm264_vm2, %v1128_v23  ;;  %v1129_v57 = vadd.f32 %v1121_v55, %v1113_v51 }
 0x328   : > { %1134 = vst.msk [vmem:[#allocation3 + $0x8] sm:$0xff] %vm264_vm2, %v1129_v57 }
 0x32d   : > { %v1472_v56 = vld [vmem:[#allocation3] sm:$0xff]  ;;  %v1144_v37 = vpop.permute.xlu0 %1143 }
 0x32e   : > { %1912 = vrcp.f32 %v1472_v56  ;;  %v1161_v41 = vmul.f32 %v1144_v37, %v1137_v39 }
 0x32f   : > { %v1473_v61 = vld [vmem:[#allocation3 + $0x8] sm:$0xff] }
 0x330   : > { %1914 = vrcp.f32 %v1473_v61 }
 0x331   : > { %v1159_v42 = vpop.permute.xlu0 %1158 }
 0x332   : > { %v1164_v60 = vmul.f32 %v1159_v42, %v1140_v47 }
 0x334   : > { %v1124_v25 = vpop.xlane.xlu1 %1123 }
 0x335   : > { %v1130_v27 = vadd.f32 %v1124_v25, %v1114_v24 }
 0x337   : > { %1135 = vst.msk [vmem:[#allocation3 + $0x10] sm:$0xff] %vm264_vm2, %v1130_v27 }
 0x338   : > { %v1913_v29 = vpop.eup %1912  ;;  %v1127_v30 = vpop.xlane.xlu1 %1126 }
 0x339   : > { %v1131_v31 = vadd.f32 %v1127_v30, %v1115_v28  ;;  %1486 = vperm.xlu1 %1894, %v1913_v29  }
 0x33a   : > { %v1915_v32 = vpop.eup %1914 }
 0x33b   : > { %1136 = vst.msk [vmem:[#allocation3 + $0x18] sm:$0xff] %vm264_vm2, %v1131_v31  ;;  %1491 = vperm.xlu0 %1895, %v1915_v32  }
 0x33c   : > { %v1149_v38 = vpop.permute.xlu1 %1148 }
 0x33d   : > { %v1162_v43 = vmul.f32 %v1149_v38, %v1138_v40 }
 0x33e   : > { %v1474_v33 = vld [vmem:[#allocation3 + $0x10] sm:$0xff] }
 0x33f   : > { %1916 = vrcp.f32 %v1474_v33 }
 0x340   : > { %v1154_v6 = vpop.permute.xlu1 %1153 }
 0x341   : > { %v1163_v59 = vmul.f32 %v1154_v6, %v1139_v44 }
 0x342   : > { %v1475_v34 = vld [vmem:[#allocation3 + $0x18] sm:$0xff] }
 0x343   : > { %1918 = vrcp.f32 %v1475_v34 }
 0x349   : > { %v1917_v35 = vpop.eup %1916 }
 0x34a   : > { %1496 = vperm.xlu1 %1894, %v1917_v35  }
 0x34d   : > { %v1919_v36 = vpop.eup %1918 }
 0x34e   : > { %1501 = vperm.xlu0 %1895, %v1919_v36  }
 0x378   : > { %v1234_v45 = vpop.f32.mrb[4].mxu0  ;;  %v1307_v46 = vpop.f32.mrb[4].mxu1 }
 0x379   : > { %v1457_v49 = vadd.f32 %v1234_v45, %v1161_v41  ;;  %v1458_v50 = vadd.f32 %v1307_v46, %v1162_v43  ;;  %v1842_v53 = vpop.f32.mrb[5].mxu0  ;;  %v1847_v54 = vpop.f32.mrb[5].mxu1 }
 0x37b   : > { %1461 = vst.msk [vmem:[#allocation4] sm:$0xff] %vm273_vm0, %v1457_v49  ;;  %1462 = vst.msk [vmem:[#allocation4 + $0x8] sm:$0xff] %vm273_vm0, %v1458_v50 }
 0x37c   : > { %v1380_v0 = vpop.f32.mrb[6].mxu0 }
 0x37d   : > { %v1459_v48 = vadd.f32 %v1380_v0, %v1163_v59  ;;  %v1453_v4 = vpop.f32.mrb[6].mxu1  ;;  %v1852_v5 = vpop.f32.mrb[7].mxu0 }
 0x37e   : > { %v1460_v7 = vadd.f32 %v1453_v4, %v1164_v60  ;;  %v1857_v8 = vpop.f32.mrb[7].mxu1 }
 0x37f   : > { %1463 = vst.msk [vmem:[#allocation4 + $0x10] sm:$0xff] %vm273_vm0, %v1459_v48 }
 0x380   : > { %1464 = vst.msk [vmem:[#allocation4 + $0x18] sm:$0xff] %vm273_vm0, %v1460_v7 }
 0x382   : > { %v1480_v12 = vld [vmem:[#allocation4] sm:$0xff]  ;;  %v1481_v1 = vld [vmem:[#allocation4 + $0x8] sm:$0xff] }
 0x386   : > { %v1482_v10 = vld [vmem:[#allocation4 + $0x10] sm:$0xff] }
 0x387   : > { %v1483_v2 = vld [vmem:[#allocation4 + $0x18] sm:$0xff] }
 0x3b8   : > { %v1487_v9 = vpop.permute.xlu1 %1486 }
 0x3b9   : > { %v1504_v62 = vmul.f32 %v1487_v9, %v1480_v12 }
 0x3ba   : > { %v1492_v11 = vpop.permute.xlu0 %1491 }
 0x3bb   : > { %v1505_v15 = vmul.f32 %v1492_v11, %v1481_v1 }
 0x3c9   : > { %v1497_v52 = vpop.permute.xlu1 %1496 }
 0x3ca   : > { %v1506_v58 = vmul.f32 %v1497_v52, %v1482_v10 }
 0x3cc   : > { %v1508_v16 = vcombine.low %v1504_v62, %v1506_v58  ;;  %v1509_v3 = vcombine.high %v1504_v62, %v1506_v58 }
 0x3cd   : > { %v1502_v13 = vpop.permute.xlu0 %1501 }
 0x3ce   : > { %v1507_v17 = vmul.f32 %v1502_v13, %v1483_v2  ;;  %v1516_v20 = vrot.slane %v1508_v16, %v2028_v14  ;;  %v1523_v22 = vrot.slane %v1509_v3, %v2028_v14 }
 0x3d0   : > { %v1524_v18 = vcombine.low %v1505_v15, %v1507_v17  ;;  %v1525_v19 = vcombine.high %v1505_v15, %v1507_v17 }
 0x3d2   : > { %v1532_v23 = vrot.slane %v1524_v18, %v2028_v14  ;;  %v1539_v51 = vrot.slane %v1525_v19, %v2028_v14 }
 0x3d4   : > { %v1540_v55 = vcombine.low %v1516_v20, %v1532_v23  ;;  %v1541_v57 = vcombine.high %v1516_v20, %v1532_v23  ;;  %v1556_v56 = vcombine.low %v1523_v22, %v1539_v51  ;;  %v1557_v61 = vcombine.high %v1523_v22, %v1539_v51 }
 0x3d6   : > { %v1548_v63 = vrot.slane %v1540_v55, %v2031_v21  ;;  %v1555_v24 = vrot.slane %v1541_v57, %v2031_v21  ;;  %v1564_v25 = vrot.slane %v1556_v56, %v2031_v21  ;;  %v1571_v26 = vrot.slane %v1557_v61, %v2031_v21 }
 0x3d8   : > { %v1576_v27 = vcombine.low %v1548_v63, %v1555_v24  ;;  %v1798_v28 = vcombine.high %v1548_v63, %v1555_v24  ;;  %v1592_v29 = vcombine.low %v1564_v25, %v1571_v26  ;;  %v1799_v30 = vcombine.high %v1564_v25, %v1571_v26 }
 0x3da   : > { %v1583_v31 = vrot.slane %v1576_v27, %v2028_v14  ;;  %v1591_v32 = vrot.slane %v1798_v28, %v2028_v14  ;;  %v1599_v33 = vrot.slane %v1592_v29, %v2028_v14  ;;  %v1607_v34 = vrot.slane %v1799_v30, %v2028_v14 }
 0x3dc   : > { %v1609_v35 = vcombine.high %v1583_v31, %v1591_v32  ;;  %v1625_v36 = vcombine.high %v1599_v33, %v1607_v34  ;;  %v1608_v37 = vcombine.low %v1583_v31, %v1591_v32  ;;  %v1624_v38 = vcombine.low %v1599_v33, %v1607_v34 }
 0x3de   : > { %v1623_v39 = vrot.slane %v1609_v35, %v2031_v21  ;;  %v1639_v40 = vrot.slane %v1625_v36, %v2031_v21  ;;  %v1616_v41 = vrot.slane %v1608_v37, %v2031_v21  ;;  %v1632_v42 = vrot.slane %v1624_v38, %v2031_v21 }
 0x3e0   : > { %v1642_v43 = vcombine.low %v1623_v39, %v1639_v40  ;;  %v1641_v6 = vcombine.high %v1616_v41, %v1632_v42  ;;  %v1640_v44 = vcombine.low %v1616_v41, %v1632_v42  ;;  %v1643_v14 = vcombine.high %v1623_v39, %v1639_v40 }
 0x3e2   : > { %1649 = vrot.lane.b32.xlu0 %v1642_v43, %s1953_s29  ;;  %1645 = vrot.lane.b32.xlu1 %v1641_v6, %s1954_s30 }
 0x3e6   : > { %1653 = vrot.lane.b32.xlu1 %v1643_v14, %s1955_s4 }
 0x454   : > { %v1646_v45 = vpop.permute.xlu1 %1645  ;;  %v1650_v46 = vpop.permute.xlu0 %1649 }
 0x455   : > { %v1657_v47 = vsel %vm273_vm0, %v1640_v44, %v1646_v45 }
 0x456   : > { %v1659_v49 = vsel %vm1658_vm4, %v1657_v47, %v1650_v46 }
 0x458   : > { %v1654_v21 = vpop.permute.xlu1 %1653 }
 0x459   : > { %v1661_v50 = vsel %vm1660_vm5, %v1659_v49, %v1654_v21 }
 0x45a   : > { %1663 = vst.msk [vmem:[%s259_s7] sm:$0xff] %vm1662_vm6, %v1661_v50 }
 0x45b PF: > { %s13_s14 = sadd.s32 1, %s1942_s14   ;;  %s2250_s12 = smov %s1938_s13 }
 0x45c   : > { %p10_p5 = scmp.ge.s32.totalorder %s13_s14, 4   ;;  %s2251_s13 = smov %s2253_s15 }
 0x45e   :  { %12 = sbr.rel (!%p10_p5) target bundleno = 2 (0x2), region = 80 }

</bundles_post_ra>
